<compile_context>
chip_gen: v7x
topology: tpu7x:2x2x1
jax: 0.10.0
libtpu: 0.0.40
codegen_flags: <defaults>
</compile_context>

<pallas_src>
import functools
import math

import jax
import jax.numpy as jnp
import numpy as np
from jax.experimental import pallas as pl
from jax.experimental.pallas import tpu as pltpu


_VMEM_LIMIT = 64 * 1024 * 1024
_SUBLANE_TILES = (512, 256, 128, 64, 32, 16, 8)   # multiples of 8
_LANE_TILES = (512, 384, 256, 128)                 # multiples of 128


def _pick_tile(dim, candidates):
    """Largest candidate tile that divides `dim`, else the full dim (always legal)."""
    for c in candidates:
        if c <= dim and dim % c == 0:
            return c
    return dim


def _gelu_tanh(x):
    # TODO(synk): PyTorch F.gelu default is the exact erf form; tanh approximation used
    # here (max abs diff ~3e-3); the in-script reference uses the same approximation.
    c = math.sqrt(2.0 / math.pi)
    return 0.5 * x * (1.0 + jnp.tanh(c * (x + 0.044715 * x * x * x)))


# ---------------------------------------------------------------------------
# Pallas kernels
# ---------------------------------------------------------------------------

def _mm_kernel(a_ref, w_ref, o_ref, acc_ref):
    @pl.when(pl.program_id(2) == 0)
    def _():
        acc_ref[...] = jnp.zeros_like(acc_ref)

    acc_ref[...] += jnp.dot(a_ref[...], w_ref[...],
                            preferred_element_type=jnp.float32)

    @pl.when(pl.program_id(2) == pl.num_programs(2) - 1)
    def _():
        o_ref[...] = acc_ref[...].astype(o_ref.dtype)


def _mm_bias_kernel(a_ref, w_ref, b_ref, o_ref, acc_ref):
    @pl.when(pl.program_id(2) == 0)
    def _():
        acc_ref[...] = jnp.zeros_like(acc_ref)

    acc_ref[...] += jnp.dot(a_ref[...], w_ref[...],
                            preferred_element_type=jnp.float32)

    @pl.when(pl.program_id(2) == pl.num_programs(2) - 1)
    def _():
        o_ref[...] = (acc_ref[...] + b_ref[...]).astype(o_ref.dtype)


def _geglu_kernel(a_ref, wx_ref, wg_ref, bx_ref, bg_ref, o_ref,
                  accx_ref, accg_ref):
    # fused: out = (a @ Wx + bx) * gelu(a @ Wg + bg)   (single pass over `a`)
    @pl.when(pl.program_id(2) == 0)
    def _():
        accx_ref[...] = jnp.zeros_like(accx_ref)
        accg_ref[...] = jnp.zeros_like(accg_ref)

    a = a_ref[...]
    accx_ref[...] += jnp.dot(a, wx_ref[...], preferred_element_type=jnp.float32)
    accg_ref[...] += jnp.dot(a, wg_ref[...], preferred_element_type=jnp.float32)

    @pl.when(pl.program_id(2) == pl.num_programs(2) - 1)
    def _():
        xpart = accx_ref[...] + bx_ref[...]
        gate = accg_ref[...] + bg_ref[...]
        o_ref[...] = (xpart * _gelu_tanh(gate)).astype(o_ref.dtype)


def _layernorm_kernel(x_ref, g_ref, b_ref, o_ref, *, eps):
    x = x_ref[...].astype(jnp.float32)
    mean = jnp.mean(x, axis=-1, keepdims=True)
    xc = x - mean
    var = jnp.mean(xc * xc, axis=-1, keepdims=True)
    inv = jax.lax.rsqrt(var + eps)
    o_ref[...] = (xc * inv * g_ref[...] + b_ref[...]).astype(o_ref.dtype)


def _attention_probs_kernel(q_ref, k_ref, v_ref, o_ref, attn_ref, *, scale):
    # q: (G, tq, d)  k,v: (G, M, d)  ->  o: (G, tq, d), attn: (G, tq, M)
    q = q_ref[...].astype(jnp.float32) * scale      # fold scale into q (d << M mults)
    k = k_ref[...].astype(jnp.float32)
    sim = jnp.einsum('gqd,gkd->gqk', q, k, preferred_element_type=jnp.float32)
    m = jnp.max(sim, axis=-1, keepdims=True)
    e = jnp.exp(sim - m)
    denom = jnp.sum(e, axis=-1, keepdims=True)
    p = e * pl.reciprocal(denom, approx=True)
    attn_ref[...] = p.astype(attn_ref.dtype)
    o = jnp.einsum('gqk,gkd->gqd', p.astype(v_ref.dtype), v_ref[...],
                   preferred_element_type=jnp.float32)
    o_ref[...] = o.astype(o_ref.dtype)


def _attention_kernel(q_ref, k_ref, v_ref, o_ref, *, scale):
    # Same as above but never materializes the attention probabilities.
    q = q_ref[...].astype(jnp.float32) * scale
    k = k_ref[...].astype(jnp.float32)
    sim = jnp.einsum('gqd,gkd->gqk', q, k, preferred_element_type=jnp.float32)
    m = jnp.max(sim, axis=-1, keepdims=True)
    e = jnp.exp(sim - m)
    denom = jnp.sum(e, axis=-1, keepdims=True)
    p = e * pl.reciprocal(denom, approx=True)
    o = jnp.einsum('gqk,gkd->gqd', p.astype(v_ref.dtype), v_ref[...],
                   preferred_element_type=jnp.float32)
    o_ref[...] = o.astype(o_ref.dtype)


# ---------------------------------------------------------------------------
# pallas_call wrappers
# ---------------------------------------------------------------------------

def pallas_matmul(a, w, bias=None):
    """Tiled, pipelined (M,K)@(K,N) [+ bias] with f32 accumulation."""
    M, K = a.shape
    K2, N = w.shape
    assert K == K2
    tm = _pick_tile(M, _SUBLANE_TILES)
    tn = _pick_tile(N, _LANE_TILES)
    tk = _pick_tile(K, _LANE_TILES)
    grid = (M // tm, N // tn, K // tk)

    in_specs = [
        pl.BlockSpec((tm, tk), lambda i, j, k: (i, k)),
        pl.BlockSpec((tk, tn), lambda i, j, k: (k, j)),
    ]
    if bias is None:
        kernel = _mm_kernel
        args = (a, w)
    else:
        kernel = _mm_bias_kernel
        in_specs.append(pl.BlockSpec((1, tn), lambda i, j, k: (0, j)))
        args = (a, w, bias.reshape(1, N))

    return pl.pallas_call(
        kernel,
        out_shape=jax.ShapeDtypeStruct((M, N), a.dtype),
        grid_spec=pltpu.PrefetchScalarGridSpec(
            num_scalar_prefetch=0,
            grid=grid,
            in_specs=in_specs,
            out_specs=pl.BlockSpec((tm, tn), lambda i, j, k: (i, j)),
            scratch_shapes=[pltpu.VMEM((tm, tn), jnp.float32)],
        ),
        compiler_params=pltpu.CompilerParams(
            dimension_semantics=("parallel", "parallel", "arbitrary"),
            vmem_limit_bytes=_VMEM_LIMIT,
        ),
    )(*args)


def pallas_geglu(a, wx, wg, bx, bg):
    """Fused GEGLU projection: (a @ Wx + bx) * gelu(a @ Wg + bg)."""
    M, K = a.shape
    _, N = wx.shape
    tm = _pick_tile(M, _SUBLANE_TILES)
    tn = _pick_tile(N, _LANE_TILES)
    tk = _pick_tile(K, _LANE_TILES)
    grid = (M // tm, N // tn, K // tk)

    return pl.pallas_call(
        _geglu_kernel,
        out_shape=jax.ShapeDtypeStruct((M, N), a.dtype),
        grid_spec=pltpu.PrefetchScalarGridSpec(
            num_scalar_prefetch=0,
            grid=grid,
            in_specs=[
                pl.BlockSpec((tm, tk), lambda i, j, k: (i, k)),
                pl.BlockSpec((tk, tn), lambda i, j, k: (k, j)),
                pl.BlockSpec((tk, tn), lambda i, j, k: (k, j)),
                pl.BlockSpec((1, tn), lambda i, j, k: (0, j)),
                pl.BlockSpec((1, tn), lambda i, j, k: (0, j)),
            ],
            out_specs=pl.BlockSpec((tm, tn), lambda i, j, k: (i, j)),
            scratch_shapes=[pltpu.VMEM((tm, tn), jnp.float32),
                            pltpu.VMEM((tm, tn), jnp.float32)],
        ),
        compiler_params=pltpu.CompilerParams(
            dimension_semantics=("parallel", "parallel", "arbitrary"),
            vmem_limit_bytes=_VMEM_LIMIT,
        ),
    )(a, wx, wg, bx.reshape(1, N), bg.reshape(1, N))


def pallas_layernorm(x2d, gamma, beta, eps=1e-5):
    R, C = x2d.shape
    tr = _pick_tile(R, _SUBLANE_TILES)
    kernel = functools.partial(_layernorm_kernel, eps=eps)
    return pl.pallas_call(
        kernel,
        out_shape=jax.ShapeDtypeStruct((R, C), x2d.dtype),
        grid_spec=pltpu.PrefetchScalarGridSpec(
            num_scalar_prefetch=0,
            grid=(R // tr,),
            in_specs=[
                pl.BlockSpec((tr, C), lambda i: (i, 0)),
                pl.BlockSpec((1, C), lambda i: (0, 0)),
                pl.BlockSpec((1, C), lambda i: (0, 0)),
            ],
            out_specs=pl.BlockSpec((tr, C), lambda i: (i, 0)),
        ),
        compiler_params=pltpu.CompilerParams(
            dimension_semantics=("parallel",),
            vmem_limit_bytes=_VMEM_LIMIT,
        ),
    )(x2d, gamma.reshape(1, C), beta.reshape(1, C))


def _attention_group_size(BH, tq, M, d, with_probs, budget=12 * 1024 * 1024):
    """Largest divisor of BH whose per-step block footprint stays within budget."""
    for G in (16, 8, 4, 2, 1):
        if BH % G:
            continue
        per_block = G * (2 * tq * d + 2 * M * d + (tq * M if with_probs else 0)) * 4
        if 2 * per_block <= budget or G == 1:
            return G
    return 1


def pallas_attention(q, k, v, scale, *, return_probs):
    """q: (BH, N, d); k, v: (BH, M, d). G heads per grid step, n-tiled, both axes parallel."""
    BH, N, d = q.shape
    _, M, _ = k.shape
    tq = _pick_tile(N, (256, 128, 64, 32, 16, 8))
    G = _attention_group_size(BH, tq, M, d, return_probs)
    grid = (BH // G, N // tq)

    q_spec = pl.BlockSpec((G, tq, d), lambda g, i: (g, i, 0))
    kv_spec = pl.BlockSpec((G, M, d), lambda g, i: (g, 0, 0))
    o_spec = pl.BlockSpec((G, tq, d), lambda g, i: (g, i, 0))

    if return_probs:
        kernel = functools.partial(_attention_probs_kernel, scale=scale)
        out_shape = (jax.ShapeDtypeStruct((BH, N, d), q.dtype),
                     jax.ShapeDtypeStruct((BH, N, M), jnp.float32))
        out_specs = [o_spec, pl.BlockSpec((G, tq, M), lambda g, i: (g, i, 0))]
    else:
        kernel = functools.partial(_attention_kernel, scale=scale)
        out_shape = jax.ShapeDtypeStruct((BH, N, d), q.dtype)
        out_specs = o_spec

    return pl.pallas_call(
        kernel,
        out_shape=out_shape,
        grid_spec=pltpu.PrefetchScalarGridSpec(
            num_scalar_prefetch=0,
            grid=grid,
            in_specs=[q_spec, kv_spec, kv_spec],
            out_specs=out_specs,
        ),
        compiler_params=pltpu.CompilerParams(
            dimension_semantics=("parallel", "parallel"),
            vmem_limit_bytes=_VMEM_LIMIT,
        ),
    )(q, k, v)


# ---------------------------------------------------------------------------
# Plain-JAX glue
# ---------------------------------------------------------------------------

def group_norm(x, gamma, beta, num_groups=32, eps=1e-6):
    # TODO(synk): GroupNorm (image-layout statistics) kept in plain JAX, not a Pallas kernel.
    B, C, H, W = x.shape
    xg = x.reshape(B, num_groups, C // num_groups, H, W)
    mean = xg.mean(axis=(2, 3, 4), keepdims=True)
    var = xg.var(axis=(2, 3, 4), keepdims=True)
    xg = (xg - mean) / jnp.sqrt(var + eps)
    x = xg.reshape(B, C, H, W)
    return x * gamma[None, :, None, None] + beta[None, :, None, None]


def _normal(key, shape, std=0.02):
    return (jax.random.normal(key, shape) * std).astype(jnp.float32)


# ---------------------------------------------------------------------------
# Modules (parameters + forward glue)
# ---------------------------------------------------------------------------

class CrossAttention:
    def __init__(self, query_dim, context_dim=None, heads=8, dim_head=64,
                 dropout=0.0, is_out=True, *, key):
        inner = heads * dim_head
        context_dim = query_dim if context_dim is None else context_dim
        self.scale = dim_head ** (-0.5)
        self.heads = heads
        self.dim_head = dim_head
        self.is_out = is_out

        kq, kk, kv, ko, kob = jax.random.split(key, 5)
        # Weights stored pre-transposed: (in_features, out_features) — no .T per call.
        self.w_q = _normal(kq, (query_dim, inner))
        self.w_k = _normal(kk, (context_dim, inner))
        self.w_v = _normal(kv, (context_dim, inner))
        self.w_out = _normal(ko, (inner, query_dim))
        self.b_out = _normal(kob, (query_dim,))
        # Fused projection weights, built once at init (single pass over activations).
        self.w_kv = jnp.concatenate([self.w_k, self.w_v], axis=1)
        self.w_qkv = (jnp.concatenate([self.w_q, self.w_k, self.w_v], axis=1)
                      if context_dim == query_dim else None)
        # Dropout p=0.0 -> identity (eval semantics).

    def __call__(self, x, context=None, mask=None):
        assert mask is None  # TODO(synk): boolean mask (masked_fill) path not implemented
        B, N, _ = x.shape
        h, d = self.heads, self.dim_head
        inner = h * d
        x2d = x.reshape(B * N, -1)

        if context is None and self.w_qkv is not None:
            # self-attention: fused QKV projection (x read from HBM once)
            M = N
            qkv = pallas_matmul(x2d, self.w_qkv)
            q2d = qkv[:, :inner]
            k2d = qkv[:, inner:2 * inner]
            v2d = qkv[:, 2 * inner:]
        else:
            context = x if context is None else context
            M = context.shape[1]
            c2d = context.reshape(B * M, -1)
            q2d = pallas_matmul(x2d, self.w_q)
            kv = pallas_matmul(c2d, self.w_kv)        # fused K+V projection
            k2d = kv[:, :inner]
            v2d = kv[:, inner:]

        # TODO(synk): head split/merge below still uses XLA transposes; absorbing it
        # into BlockSpec index_maps requires dim_head % 128 == 0.
        def split_heads(t, s):
            return (t.reshape(B, s, h, d)
                     .transpose(0, 2, 1, 3)
                     .reshape(B * h, s, d))

        qh = split_heads(q2d, N)
        kh = split_heads(k2d, M)
        vh = split_heads(v2d, M)

        if self.is_out:
            out_h, attn = pallas_attention(qh, kh, vh, self.scale, return_probs=True)
        else:
            out_h = pallas_attention(qh, kh, vh, self.scale, return_probs=False)
            attn = None

        out2d = (out_h.reshape(B, h, N, d)
                      .transpose(0, 2, 1, 3)
                      .reshape(B * N, inner))
        out2d = pallas_matmul(out2d, self.w_out, bias=self.b_out)
        out = out2d.reshape(B, N, -1)
        return (out, attn) if self.is_out else out


class FeedForward:
    def __init__(self, dim, dim_out=None, mult=4, glu=True, dropout=0.0, *, key):
        assert glu  # spec uses gated_ff=True -> GEGLU branch
        inner = int(dim * mult)
        dim_out = dim if dim_out is None else dim_out
        self.inner = inner
        k1, k1b, k2, k2b = jax.random.split(key, 4)
        self.w_geglu = _normal(k1, (dim, inner * 2))
        self.b_geglu = _normal(k1b, (inner * 2,))
        # pre-split halves for the fused kernel (torch .chunk(2, dim=-1) ordering)
        self.w_x, self.w_g = self.w_geglu[:, :inner], self.w_geglu[:, inner:]
        self.b_x, self.b_g = self.b_geglu[:inner], self.b_geglu[inner:]
        self.w2 = _normal(k2, (inner, dim_out))
        self.b2 = _normal(k2b, (dim_out,))
        # Dropout p=0.0 -> identity.

    def __call__(self, x):
        B, N, C = x.shape
        h1 = pallas_geglu(x.reshape(B * N, C), self.w_x, self.w_g, self.b_x, self.b_g)
        out = pallas_matmul(h1, self.w2, bias=self.b2)
        return out.reshape(B, N, -1)


class BasicTransformerBlock:
    def __init__(self, dim, n_heads, d_head, dropout=0.0, context_dim=None,
                 gated_ff=True, checkpoint=True, is_out=True, *, key):
        k1, k2, k3, kn = jax.random.split(key, 4)
        self.attn1 = CrossAttention(dim, heads=n_heads, dim_head=d_head,
                                    dropout=dropout, is_out=False, key=k1)
        self.attn2 = CrossAttention(dim, context_dim=context_dim, heads=n_heads,
                                    dim_head=d_head, dropout=dropout, is_out=True, key=k2)
        self.ff = FeedForward(dim, dropout=dropout, glu=gated_ff, key=k3)
        kg1, kg2, kg3, kb1, kb2, kb3 = jax.random.split(kn, 6)
        self.g1 = 1.0 + _normal(kg1, (dim,)); self.b1 = _normal(kb1, (dim,))
        self.g2 = 1.0 + _normal(kg2, (dim,)); self.b2 = _normal(kb2, (dim,))
        self.g3 = 1.0 + _normal(kg3, (dim,)); self.b3 = _normal(kb3, (dim,))
        # Spec's `attnc` is constructed but never used in forward -> omitted.
        # Gradient checkpointing is a training-time memory trick; forward is identical.

    def __call__(self, x, context=None):
        B, N, C = x.shape

        def ln(t, g, b):
            return pallas_layernorm(t.reshape(B * N, C), g, b).reshape(B, N, C)

        x = x + self.attn1(ln(x, self.g1, self.b1))
        x2, att = self.attn2(ln(x, self.g2, self.b2), context=context, mask=None)
        x = x + x2
        x = x + self.ff(ln(x, self.g3, self.b3))
        return x, att


class SpatialTransformer:
    def __init__(self, in_channels, n_heads, d_head, depth=1, dropout=0.0,
                 context_dim=None, part='encoder', vocab_size=None, *, key):
        inner = n_heads * d_head
        self.in_channels = in_channels
        self.inner_dim = inner
        self.part = part
        keys = jax.random.split(key, depth + 5)
        self.gn_gamma = 1.0 + _normal(keys[0], (in_channels,))
        self.gn_beta = _normal(keys[1], (in_channels,))
        # 1x1 convs stored as pointwise linears, pre-transposed (in, out).
        self.w_proj_in = _normal(keys[2], (in_channels, inner))
        self.b_proj_in = _normal(keys[3], (inner,))
        # NOTE: the spec zero-initializes proj_out (zero_module); random init is used
        # here so the numerical check exercises the full output path (same forward math).
        kpo, kpb = jax.random.split(keys[4], 2)
        self.w_proj_out = _normal(kpo, (inner, in_channels))
        self.b_proj_out = _normal(kpb, (in_channels,))
        self.blocks = [
            BasicTransformerBlock(inner, n_heads, d_head, dropout=dropout,
                                  context_dim=context_dim, key=keys[5 + i])
            for i in range(depth)
        ]

    def __call__(self, x, context=None):
        # TODO(synk): only the part != 'sca' (rearrange-to-tokens) branch is implemented.
        assert self.part != 'sca'
        B, C, H, W = x.shape
        x_in = x
        xn = group_norm(x, self.gn_gamma, self.gn_beta, num_groups=32, eps=1e-6)
        # 1x1 convs are pointwise linears: do 'b c h w -> b (h w) c' first, then matmul.
        xt = xn.transpose(0, 2, 3, 1).reshape(B * H * W, C)
        xt = pallas_matmul(xt, self.w_proj_in, bias=self.b_proj_in)
        xt = xt.reshape(B, H * W, self.inner_dim)
        att = None
        for blk in self.blocks:
            xt, att = blk(xt, context=context)
        x2d = pallas_matmul(xt.reshape(B * H * W, self.inner_dim),
                            self.w_proj_out, bias=self.b_proj_out)
        out = x2d.reshape(B, H, W, C).transpose(0, 3, 1, 2)
        return out + x_in, att


# ---------------------------------------------------------------------------
# Plain-JAX reference for the sanity check
# ---------------------------------------------------------------------------

def _ref_layernorm(x, g, b, eps=1e-5):
    mean = x.mean(-1, keepdims=True)
    var = ((x - mean) ** 2).mean(-1, keepdims=True)
    return (x - mean) / jnp.sqrt(var + eps) * g + b


def _ref_cross_attention(mod, x, context=None):
    B, N, _ = x.shape
    context = x if context is None else context
    M = context.shape[1]
    h, d = mod.heads, mod.dim_head
    q = x @ mod.w_q
    k = context @ mod.w_k
    v = context @ mod.w_v

    def split(t, s):
        return t.reshape(B, s, h, d).transpose(0, 2, 1, 3).reshape(B * h, s, d)

    qh, kh, vh = split(q, N), split(k, M), split(v, M)
    sim = jnp.einsum('bid,bjd->bij', qh, kh) * mod.scale
    attn = jax.nn.softmax(sim, axis=-1)
    out = jnp.einsum('bij,bjd->bid', attn, vh)
    out = out.reshape(B, h, N, d).transpose(0, 2, 1, 3).reshape(B, N, h * d)
    out = out @ mod.w_out + mod.b_out
    return (out, attn) if mod.is_out else out


def _ref_feedforward(ff, x):
    proj = x @ ff.w_geglu + ff.b_geglu
    a, gate = proj[..., :ff.inner], proj[..., ff.inner:]
    hgelu = a * jax.nn.gelu(gate, approximate=True)
    return hgelu @ ff.w2 + ff.b2


def _ref_block(blk, x, context):
    x = x + _ref_cross_attention(blk.attn1, _ref_layernorm(x, blk.g1, blk.b1))
    x2, att = _ref_cross_attention(blk.attn2, _ref_layernorm(x, blk.g2, blk.b2), context)
    x = x + x2
    x = x + _ref_feedforward(blk.ff, _ref_layernorm(x, blk.g3, blk.b3))
    return x, att


def reference_forward(st, x, context):
    B, C, H, W = x.shape
    x_in = x
    xn = group_norm(x, st.gn_gamma, st.gn_beta, num_groups=32, eps=1e-6)
    xt = xn.transpose(0, 2, 3, 1).reshape(B, H * W, C)
    xt = xt @ st.w_proj_in + st.b_proj_in
    att = None
    for blk in st.blocks:
        xt, att = _ref_block(blk, xt, context)
    xt = xt @ st.w_proj_out + st.b_proj_out
    out = xt.reshape(B, H, W, C).transpose(0, 3, 1, 2)
    return out + x_in, att


# ---------------------------------------------------------------------------

if __name__ == "__main__":
    key = jax.random.PRNGKey(0)
    k_param, k_x, k_ctx = jax.random.split(key, 3)

    # in_channels must be a multiple of 32 (GroupNorm with 32 groups).
    B, C, H, W = 2, 32, 8, 8
    n_heads, d_head = 2, 16        # inner_dim = 32
    M_ctx, context_dim = 8, 32     # context seq / channels

    st = SpatialTransformer(C, n_heads, d_head, depth=1,
                            context_dim=context_dim, key=k_param)

    x = jax.random.normal(k_x, (B, C, H, W), dtype=jnp.float32)
    ctx = jax.random.normal(k_ctx, (B, M_ctx, context_dim), dtype=jnp.float32)

    out, att = st(x, context=ctx)
    out = jax.block_until_ready(out)
    att = jax.block_until_ready(att)

    ref_out, ref_att = reference_forward(st, x, ctx)
    np.testing.assert_allclose(np.asarray(out), np.asarray(ref_out),
                               rtol=2e-3, atol=2e-3)
    np.testing.assert_allclose(np.asarray(att), np.asarray(ref_att),
                               rtol=2e-3, atol=2e-3)

    print("KERNEL_OK")
</pallas_src>

<mosaic_0001>
module attributes {stable_mosaic.version = 11 : i64} {
  func.func @_mm_bias_kernel(%arg0: i32, %arg1: i32, %arg2: i32, %arg3: memref<128x32xf32, #tpu.memory_space<vmem>>, %arg4: memref<32x32xf32, #tpu.memory_space<vmem>>, %arg5: memref<1x32xf32, #tpu.memory_space<vmem>>, %arg6: memref<128x32xf32, #tpu.memory_space<vmem>>, %arg7: memref<128x32xf32, #tpu.memory_space<vmem>>) attributes {dimension_semantics = [#tpu.dimension_semantics<parallel>, #tpu.dimension_semantics<parallel>, #tpu.dimension_semantics<arbitrary>], iteration_bounds = array<i64: 1, 1, 1>, scalar_prefetch = 0 : i64, scratch_operands = 1 : i64, tpu.core_type = #tpu.core_type<tc>, window_params = [{transform_indices = @transform_0, window_bounds = array<i64: 128, 32>}, {transform_indices = @transform_1, window_bounds = array<i64: 32, 32>}, {transform_indices = @transform_2, window_bounds = array<i64: 1, 32>}, {transform_indices = @transform_3, window_bounds = array<i64: 128, 32>}]} {
    %c0_i32 = arith.constant 0 : i32
    %0 = arith.cmpi eq, %arg2, %c0_i32 : i32
    %1 = arith.extui %0 : i1 to i32
    %c0_i32_0 = arith.constant 0 : i32
    %2 = arith.cmpi ne, %1, %c0_i32_0 : i32
    scf.if %2 {
      %cst_10 = arith.constant 0.000000e+00 : f32
      %12 = vector.broadcast %cst_10 : f32 to vector<128x32xf32>
      %c0_11 = arith.constant 0 : index
      %c0_12 = arith.constant 0 : index
      %13 = vector.load %arg7[%c0_11, %c0_12] : memref<128x32xf32, #tpu.memory_space<vmem>>, vector<128x32xf32>
      tpu.vector_store %arg7[%c0_11, %c0_12], %12 {strides = array<i32>} : memref<128x32xf32, #tpu.memory_space<vmem>>, vector<128x32xf32>,
    } else {
    }
    %c0 = arith.constant 0 : index
    %c0_1 = arith.constant 0 : index
    %3 = vector.load %arg7[%c0, %c0_1] : memref<128x32xf32, #tpu.memory_space<vmem>>, vector<128x32xf32>
    %c0_2 = arith.constant 0 : index
    %c0_3 = arith.constant 0 : index
    %4 = vector.load %arg3[%c0_2, %c0_3] : memref<128x32xf32, #tpu.memory_space<vmem>>, vector<128x32xf32>
    %c0_4 = arith.constant 0 : index
    %c0_5 = arith.constant 0 : index
    %5 = vector.load %arg4[%c0_4, %c0_5] : memref<32x32xf32, #tpu.memory_space<vmem>>, vector<32x32xf32>
    %cst = arith.constant dense<0.000000e+00> : vector<128x32xf32>
    %6 = tpu.matmul %4, %5, %cst {dimension_numbers = #tpu.dot_dimension_numbers<[1], [0], [0], [1], [0, 0, 1, 1], [], []>} : vector<128x32xf32>, vector<32x32xf32>, vector<128x32xf32> -> vector<128x32xf32>
    %7 = arith.addf %3, %6 : vector<128x32xf32>
    %c0_6 = arith.constant 0 : index
    %c0_7 = arith.constant 0 : index
    %8 = vector.load %arg7[%c0_6, %c0_7] : memref<128x32xf32, #tpu.memory_space<vmem>>, vector<128x32xf32>
    tpu.vector_store %arg7[%c0_6, %c0_7], %7 {strides = array<i32>} : memref<128x32xf32, #tpu.memory_space<vmem>>, vector<128x32xf32>,
    %c0_i32_8 = arith.constant 0 : i32
    %9 = arith.cmpi eq, %arg2, %c0_i32_8 : i32
    %10 = arith.extui %9 : i1 to i32
    %c0_i32_9 = arith.constant 0 : i32
    %11 = arith.cmpi ne, %10, %c0_i32_9 : i32
    scf.if %11 {
      %c0_10 = arith.constant 0 : index
      %c0_11 = arith.constant 0 : index
      %12 = vector.load %arg7[%c0_10, %c0_11] : memref<128x32xf32, #tpu.memory_space<vmem>>, vector<128x32xf32>
      %c0_12 = arith.constant 0 : index
      %c0_13 = arith.constant 0 : index
      %13 = vector.load %arg5[%c0_12, %c0_13] : memref<1x32xf32, #tpu.memory_space<vmem>>, vector<1x32xf32>
      %14 = vector.broadcast %13 : vector<1x32xf32> to vector<128x32xf32>
      %15 = arith.addf %12, %14 : vector<128x32xf32>
      %c0_14 = arith.constant 0 : index
      %c0_15 = arith.constant 0 : index
      %16 = vector.load %arg6[%c0_14, %c0_15] : memref<128x32xf32, #tpu.memory_space<vmem>>, vector<128x32xf32>
      tpu.vector_store %arg6[%c0_14, %c0_15], %15 {strides = array<i32>} : memref<128x32xf32, #tpu.memory_space<vmem>>, vector<128x32xf32>,
    } else {
    }
    return
  }
  func.func @transform_0(%arg0: i32, %arg1: i32, %arg2: i32) -> (i32, i32) {
    %c0_i32 = arith.constant 0 : i32
    return %arg0, %arg2 : i32, i32
  }
  func.func @transform_1(%arg0: i32, %arg1: i32, %arg2: i32) -> (i32, i32) {
    %c0_i32 = arith.constant 0 : i32
    return %arg2, %arg1 : i32, i32
  }
  func.func @transform_2(%arg0: i32, %arg1: i32, %arg2: i32) -> (i32, i32) {
    %c0_i32 = arith.constant 0 : i32
    %c0_i32_0 = arith.constant 0 : i32
    return %c0_i32, %arg1 : i32, i32
  }
  func.func @transform_3(%arg0: i32, %arg1: i32, %arg2: i32) -> (i32, i32) {
    %c0_i32 = arith.constant 0 : i32
    return %arg0, %arg1 : i32, i32
  }
}

</mosaic_0001>

<bundles_post_ra>
// kernel: tpu_custom_call.1
= control target key start
LH: loop header
LB: loop body
LE: loop exit
PB: predicated region body
PF: predicated region fallthrough
CT: control target
= control target key end

     0   :  { %8 = vsyncpa [#allocation4], 0  ;;  %s768_s0 = inlined_call_operand.hbm [shape: f32[128,32], index: 0, kind: input, shape index: {}]   ;;  %s769_s1 = inlined_call_operand.hbm [shape: f32[32,32], index: 1, kind: input, shape index: {}]   ;;  %s770_s2 = inlined_call_operand.hbm [shape: f32[1,32], index: 2, kind: input, shape index: {}]   ;;  %s771_s3 = inlined_call_operand.hbm [shape: f32[128,32], index: 3, kind: output, shape index: {}]  }
   0x1   :  { %9 = vsyncpa [#allocation7], 0 }
   0x2   :  { %10 = vsyncpa [#allocation5], 0  ;;  %s595_s12 = smov [#allocation6]   ;;  %s596_s14 = smov [#allocation3]  }
   0x3   :  { %s28_s13 = sshll.u32 %s595_s12, 4  ;;  %s16_s15 = sshll.u32 %s596_s14, 4  ;;  %s29_s13 = int_to_ptr.vmem [resolvable:$true] %s28_s13  ;;  %s622_s15 = int_to_ptr.vmem [resolvable:$true] %s16_s15 }
   0x4   :  { %s501_s18 = scalar_lea.hbm %s769_s1, 512 }
   0x5   :  { %p502_p0 = scmp.ne.s32.totalorder %s769_s1, %s501_s18  ;;  %p505_p1 = scmp.lt.u32.totalorder %s501_s18, %s769_s1 }
   0x7   :  { %p507_p2 = pnand %p505_p1, %p502_p0 }
   0x9   :  { %510 = shalt.err (!%p507_p2)
}
   0xa   :  { %s511_s23 = scalar_lea.vmem %s29_s13, 512  ;;  %p516_p4 = scmp.lt.s32.totalorder %s29_s13, %s29_s13 }
   0xb   :  { %p512_p3 = scmp.ne.s32.totalorder %s29_s13, %s511_s23  ;;  %p517_p5 = scmp.lt.s32.totalorder %s511_s23, %s511_s23 }
   0xd   :  { %p518_p6 = por %p517_p5, %p516_p4 }
   0xf   :  { %p519_p7 = pnand %p518_p6, %p512_p3 }
  0x11   :  { %522 = shalt.err (!%p519_p7)
}
  0x12   :  { %s597_s24 = smov 128   ;;  %s598_s25 = smov 8  }
  0x13   :  { %34 = dma.hbm_to_vmem [thread:$0]  %s769_s1, 512, %s29_s13, [#allocation7], %s597_s24, %s597_s24, %s598_s25  }
  0x14   :  { %s523_s30 = scalar_lea.hbm %s768_s0, 2048 }
  0x15   :  { %p524_p8 = scmp.ne.s32.totalorder %s768_s0, %s523_s30  ;;  %p527_p9 = scmp.lt.u32.totalorder %s523_s30, %s768_s0 }
  0x17   :  { %p529_p10 = pnand %p527_p9, %p524_p8 }
  0x19   :  { %532 = shalt.err (!%p529_p10)
}
  0x1a   :  { %s533_s8 = scalar_lea.vmem %s622_s15, 2048  ;;  %p538_p12 = scmp.lt.s32.totalorder %s622_s15, %s622_s15 }
  0x1b   :  { %p534_p11 = scmp.ne.s32.totalorder %s622_s15, %s533_s8  ;;  %p539_p13 = scmp.lt.s32.totalorder %s533_s8, %s533_s8 }
  0x1d   :  { %p540_p0 = por %p539_p13, %p538_p12 }
  0x1f   :  { %p541_p1 = pnand %p540_p0, %p534_p11 }
  0x21   :  { %544 = shalt.err (!%p541_p1)
}
  0x22   :  { %22 = dma.hbm_to_vmem [thread:$0]  %s768_s0, 2048, %s622_s15, [#allocation4], %s597_s24, %s597_s24, %s598_s25  }
  0x23   :  { %s599_s10 = smov [#allocation8]   ;;  %s545_s14 = scalar_lea.hbm %s770_s2, 16 }
  0x24   :  { %s41_s11 = sshll.u32 %s599_s10, 4  ;;  %p546_p2 = scmp.ne.s32.totalorder %s770_s2, %s545_s14  ;;  %s42_s11 = int_to_ptr.vmem [resolvable:$true] %s41_s11 }
  0x25   :  { %p549_p3 = scmp.lt.u32.totalorder %s545_s14, %s770_s2 }
  0x27   :  { %p551_p4 = pnand %p549_p3, %p546_p2 }
  0x29   :  { %554 = shalt.err (!%p551_p4)
}
  0x2a   :  { %s555_s20 = scalar_lea.vmem %s42_s11, 16  ;;  %s559_s0 = scalar_lea.vmem %s42_s11, 32 }
  0x2b   :  { %p556_p5 = scmp.ne.s32.totalorder %s42_s11, %s555_s20  ;;  %p560_p6 = scmp.lt.s32.totalorder %s42_s11, %s42_s11 }
  0x2c   :  { %p561_p7 = scmp.lt.s32.totalorder %s559_s0, %s555_s20 }
  0x2e   :  { %p562_p8 = por %p561_p7, %p560_p6 }
  0x30   :  { %p563_p9 = pnand %p562_p8, %p556_p5 }
  0x32   :  { %566 = shalt.err (!%p563_p9)
}
  0x33   :  { %44 = dma.hbm_to_vmem [thread:$0]  %s770_s2, 16, %s42_s11, [#allocation7]  }
  0x34   :  { %589 = dma.done.wait [#allocation4], 2048  }
  0x35   :  { %590 = vsyncadd [#allocation4], 4294965248 }
  0x36   :  { %591 = dma.done.wait [#allocation7], 528  }
  0x37   :  { %592 = vsyncadd [#allocation7], 4294966768  ;;  %vm58_vm0 = vcmask 261120   ;;  %v600_v0 = vmov 0.0   ;;  %v107_v1 = vld [vmem:[#allocation6] sm:$0xff]  ;;  %v108_v2 = vld [vmem:[#allocation6 + $0x8] sm:$0xff] }
  0x38   :  { %60 = vst.msk [vmem:[#allocation2 + $0x8] sm:$0xff] %vm58_vm0, %v600_v0  ;;  %59 = vst.msk [vmem:[#allocation2] sm:$0xff] %vm58_vm0, %v600_v0  ;;  %v109_v3 = vld [vmem:[#allocation6 + $0x10] sm:$0xff]  ;;  %v482_v4 = vpack.c.bf16 %v108_v2, %v107_v1  ;;  %v110_v5 = vld [vmem:[#allocation6 + $0x18] sm:$0xff]  ;;  %s601_s2 = smov [#allocation9]  }
  0x39   :  { %61 = vst.msk [vmem:[#allocation2 + $0x10] sm:$0xff] %vm58_vm0, %v600_v0  ;;  %62 = vst.msk [vmem:[#allocation2 + $0x18] sm:$0xff] %vm58_vm0, %v600_v0  ;;  %v91_v6 = vld [vmem:[#allocation3] sm:$0xff]  ;;  %v486_v8 = vpack.c.bf16 %v110_v5, %v109_v3  ;;  %v92_v9 = vld [vmem:[#allocation3 + $0x8] sm:$0xff]  ;;  %s400_s22 = sshll.u32 %s601_s2, 4  ;;  %s401_s22 = int_to_ptr.vmem [resolvable:$true] %s400_s22 }
  0x3a   :  { %63 = vst.msk [vmem:[#allocation2 + $0x20] sm:$0xff] %vm58_vm0, %v600_v0  ;;  %64 = vst.msk [vmem:[#allocation2 + $0x28] sm:$0xff] %vm58_vm0, %v600_v0  ;;  %v99_v7 = vld [vmem:[#allocation3 + $0x40] sm:$0xff]  ;;  %458 = vmatprep.mubr.msk.f32.mxu0 %vm58_vm0, %v91_v6  ;;  %483 = vmatprep.subr.bf16.mxu0 %v482_v4  ;;  %v100_v10 = vld [vmem:[#allocation3 + $0x48] sm:$0xff]  ;;  %s567_s23 = scalar_lea.vmem %s401_s22, 2048  ;;  %p572_p11 = scmp.lt.s32.totalorder %s401_s22, %s401_s22 }
  0x3b   :  { %65 = vst.msk [vmem:[#allocation2 + $0x30] sm:$0xff] %vm58_vm0, %v600_v0  ;;  %66 = vst.msk [vmem:[#allocation2 + $0x38] sm:$0xff] %vm58_vm0, %v600_v0  ;;  %470 = vmatprep.mubr.msk.f32.mxu1 %vm58_vm0, %v99_v7  ;;  %490 = vmatprep.subr.bf16.mxu1 %v482_v4  ;;  %v93_v11 = vld [vmem:[#allocation3 + $0x10] sm:$0xff]  ;;  %v94_v13 = vld [vmem:[#allocation3 + $0x18] sm:$0xff]  ;;  %p568_p10 = scmp.ne.s32.totalorder %s401_s22, %s567_s23  ;;  %p573_p12 = scmp.lt.s32.totalorder %s567_s23, %s567_s23 }
  0x3c   :  { %67 = vst.msk [vmem:[#allocation2 + $0x40] sm:$0xff] %vm58_vm0, %v600_v0  ;;  %68 = vst.msk [vmem:[#allocation2 + $0x48] sm:$0xff] %vm58_vm0, %v600_v0  ;;  %485 = vmatpush3.bf16.msra.mxu0 %v482_v4  ;;  %492 = vmatpush3.bf16.msra.mxu1 %v482_v4  ;;  %v101_v12 = vld [vmem:[#allocation3 + $0x50] sm:$0xff]  ;;  %v102_v14 = vld [vmem:[#allocation3 + $0x58] sm:$0xff] }
  0x3d   :  { %69 = vst.msk [vmem:[#allocation2 + $0x50] sm:$0xff] %vm58_vm0, %v600_v0  ;;  %70 = vst.msk [vmem:[#allocation2 + $0x58] sm:$0xff] %vm58_vm0, %v600_v0  ;;  %487 = vmatprep.subr.bf16.mxu0 %v486_v8  ;;  %491 = vmatprep.subr.bf16.mxu1 %v486_v8  ;;  %v95_v15 = vld [vmem:[#allocation3 + $0x20] sm:$0xff]  ;;  %v96_v17 = vld [vmem:[#allocation3 + $0x28] sm:$0xff]  ;;  %p574_p13 = por %p573_p12, %p572_p11 }
  0x3e   :  { %71 = vst.msk [vmem:[#allocation2 + $0x60] sm:$0xff] %vm58_vm0, %v600_v0  ;;  %72 = vst.msk [vmem:[#allocation2 + $0x68] sm:$0xff] %vm58_vm0, %v600_v0  ;;  %v103_v16 = vld [vmem:[#allocation3 + $0x60] sm:$0xff]  ;;  %v104_v18 = vld [vmem:[#allocation3 + $0x68] sm:$0xff] }
  0x3f   :  { %73 = vst.msk [vmem:[#allocation2 + $0x70] sm:$0xff] %vm58_vm0, %v600_v0  ;;  %74 = vst.msk [vmem:[#allocation2 + $0x78] sm:$0xff] %vm58_vm0, %v600_v0  ;;  %v97_v19 = vld [vmem:[#allocation3 + $0x30] sm:$0xff]  ;;  %v98_v21 = vld [vmem:[#allocation3 + $0x38] sm:$0xff]  ;;  %p575_p0 = pnand %p574_p13, %p568_p10 }
  0x40   :  { %489 = vmatpush3.bf16.msra.mxu0 %v486_v8  ;;  %493 = vmatpush3.bf16.msra.mxu1 %v486_v8  ;;  %v105_v20 = vld [vmem:[#allocation3 + $0x70] sm:$0xff]  ;;  %v106_v22 = vld [vmem:[#allocation3 + $0x78] sm:$0xff]  ;;  %v76_v23 = vld [vmem:[#allocation2 + $0x8] sm:$0xff] }
  0x41   :  { %v75_v25 = vld [vmem:[#allocation2] sm:$0xff]  ;;  %v78_v35 = vld [vmem:[#allocation2 + $0x18] sm:$0xff]  ;;  %v77_v37 = vld [vmem:[#allocation2 + $0x10] sm:$0xff] }
  0x42   :  { %v80_v47 = vld [vmem:[#allocation2 + $0x28] sm:$0xff]  ;;  %v79_v49 = vld [vmem:[#allocation2 + $0x20] sm:$0xff]  ;;  %v82_v58 = vld [vmem:[#allocation2 + $0x38] sm:$0xff] }
  0x43   :  { %459 = vmatmul.mubr.msk.f32.vlgmr.msra.gmra.mrb[0].mxu0 %vm58_vm0, %v92_v9  ;;  %471 = vmatmul.mubr.msk.f32.vlgmr.msra.gmra.mrb[0].mxu1 %vm58_vm0, %v100_v10  ;;  %v84_v24 = vld [vmem:[#allocation2 + $0x48] sm:$0xff]  ;;  %v83_v26 = vld [vmem:[#allocation2 + $0x40] sm:$0xff]  ;;  %v81_v0 = vld [vmem:[#allocation2 + $0x30] sm:$0xff] }
  0x44   :  { %461 = vmatprep.mubr.msk.f32.mxu0 %vm58_vm0, %v93_v11  ;;  %473 = vmatprep.mubr.msk.f32.mxu1 %vm58_vm0, %v101_v12  ;;  %v86_v36 = vld [vmem:[#allocation2 + $0x58] sm:$0xff]  ;;  %v85_v38 = vld [vmem:[#allocation2 + $0x50] sm:$0xff]  ;;  %v709_v51 = vld [vmem:[#allocation8] ss:$0 sm:$0xff] }
  0x45   :  { %v88_v48 = vld [vmem:[#allocation2 + $0x68] sm:$0xff]  ;;  %v87_v50 = vld [vmem:[#allocation2 + $0x60] sm:$0xff] }
  0x46   :  { %v90_v59 = vld [vmem:[#allocation2 + $0x78] sm:$0xff]  ;;  %v89_v5 = vld [vmem:[#allocation2 + $0x70] sm:$0xff] }
  0x47   :  { %462 = vmatmul.mubr.msk.f32.gmra.mrb[2].mxu0 %vm58_vm0, %v94_v13  ;;  %474 = vmatmul.mubr.msk.f32.gmra.mrb[2].mxu1 %vm58_vm0, %v102_v14 }
  0x48   :  { %464 = vmatprep.mubr.msk.f32.mxu0 %vm58_vm0, %v95_v15  ;;  %476 = vmatprep.mubr.msk.f32.mxu1 %vm58_vm0, %v103_v16 }
  0x4b   :  { %465 = vmatmul.mubr.msk.f32.gmra.mrb[4].mxu0 %vm58_vm0, %v96_v17  ;;  %477 = vmatmul.mubr.msk.f32.gmra.mrb[4].mxu1 %vm58_vm0, %v104_v18 }
  0x4c   :  { %467 = vmatprep.mubr.msk.f32.mxu0 %vm58_vm0, %v97_v19  ;;  %479 = vmatprep.mubr.msk.f32.mxu1 %vm58_vm0, %v105_v20 }
  0x4f   :  { %468 = vmatmul.mubr.msk.f32.gmra.mrb[6].mxu0 %vm58_vm0, %v98_v21  ;;  %480 = vmatmul.mubr.msk.f32.gmra.mrb[6].mxu1 %vm58_vm0, %v106_v22 }
 0x116   :  { %v460_v27 = vpop.f32.mrb[0].mxu0  ;;  %v472_v28 = vpop.f32.mrb[0].mxu1 }
 0x117   :  { %v306_v29 = vadd.f32 %v460_v27, %v76_v23  ;;  %v314_v30 = vadd.f32 %v472_v28, %v84_v24  ;;  %v226_v31 = vpop.f32.mrb[1].mxu0  ;;  %v266_v32 = vpop.f32.mrb[1].mxu1 }
 0x118   :  { %v305_v33 = vadd.f32 %v226_v31, %v75_v25  ;;  %v313_v34 = vadd.f32 %v266_v32, %v83_v26 }
 0x119   :  { %322 = vst.msk [vmem:[#allocation2 + $0x8] sm:$0xff] %vm58_vm0, %v306_v29  ;;  %330 = vst.msk [vmem:[#allocation2 + $0x48] sm:$0xff] %vm58_vm0, %v314_v30 }
 0x11a   :  { %321 = vst.msk [vmem:[#allocation2] sm:$0xff] %vm58_vm0, %v305_v33  ;;  %329 = vst.msk [vmem:[#allocation2 + $0x40] sm:$0xff] %vm58_vm0, %v313_v34  ;;  %v463_v39 = vpop.f32.mrb[2].mxu0  ;;  %v475_v40 = vpop.f32.mrb[2].mxu1 }
 0x11b   :  { %v308_v41 = vadd.f32 %v463_v39, %v78_v35  ;;  %v316_v42 = vadd.f32 %v475_v40, %v86_v36  ;;  %v236_v43 = vpop.f32.mrb[3].mxu0  ;;  %v276_v44 = vpop.f32.mrb[3].mxu1 }
 0x11c   :  { %v307_v45 = vadd.f32 %v236_v43, %v77_v37  ;;  %v315_v46 = vadd.f32 %v276_v44, %v85_v38 }
 0x11d   :  { %324 = vst.msk [vmem:[#allocation2 + $0x18] sm:$0xff] %vm58_vm0, %v308_v41  ;;  %332 = vst.msk [vmem:[#allocation2 + $0x58] sm:$0xff] %vm58_vm0, %v316_v42 }
 0x11e   :  { %323 = vst.msk [vmem:[#allocation2 + $0x10] sm:$0xff] %vm58_vm0, %v307_v45  ;;  %331 = vst.msk [vmem:[#allocation2 + $0x50] sm:$0xff] %vm58_vm0, %v315_v46  ;;  %v466_v52 = vpop.f32.mrb[4].mxu0  ;;  %v478_v53 = vpop.f32.mrb[4].mxu1 }
 0x11f   :  { %v310_v54 = vadd.f32 %v466_v52, %v80_v47  ;;  %v318_v55 = vadd.f32 %v478_v53, %v88_v48  ;;  %v246_v56 = vpop.f32.mrb[5].mxu0  ;;  %v286_v57 = vpop.f32.mrb[5].mxu1 }
 0x120   :  { %v341_v60 = vld [vmem:[#allocation2 + $0x8] sm:$0xff]  ;;  %v309_v62 = vadd.f32 %v246_v56, %v79_v49  ;;  %v317_v63 = vadd.f32 %v286_v57, %v87_v50 }
 0x121   :  { %v349_v61 = vld [vmem:[#allocation2 + $0x48] sm:$0xff]  ;;  %v364_v1 = vadd.f32 %v709_v51, %v341_v60  ;;  %v340_v3 = vld [vmem:[#allocation2] sm:$0xff]  ;;  %326 = vst.msk [vmem:[#allocation2 + $0x28] sm:$0xff] %vm58_vm0, %v310_v54  ;;  %334 = vst.msk [vmem:[#allocation2 + $0x68] sm:$0xff] %vm58_vm0, %v318_v55 }
 0x122   :  { %v372_v2 = vadd.f32 %v709_v51, %v349_v61  ;;  %v348_v4 = vld [vmem:[#allocation2 + $0x40] sm:$0xff]  ;;  %v363_v6 = vadd.f32 %v709_v51, %v340_v3  ;;  %325 = vst.msk [vmem:[#allocation2 + $0x20] sm:$0xff] %vm58_vm0, %v309_v62  ;;  %333 = vst.msk [vmem:[#allocation2 + $0x60] sm:$0xff] %vm58_vm0, %v317_v63  ;;  %v469_v8 = vpop.f32.mrb[6].mxu0  ;;  %v481_v9 = vpop.f32.mrb[6].mxu1 }
 0x123   :  { %v371_v7 = vadd.f32 %v709_v51, %v348_v4  ;;  %380 = vst.msk [vmem:[#allocation9 + $0x8] sm:$0xff] %vm58_vm0, %v364_v1  ;;  %v312_v10 = vadd.f32 %v469_v8, %v82_v58  ;;  %v320_v11 = vadd.f32 %v481_v9, %v90_v59  ;;  %v256_v12 = vpop.f32.mrb[7].mxu0  ;;  %v296_v13 = vpop.f32.mrb[7].mxu1 }
 0x124   :  { %388 = vst.msk [vmem:[#allocation9 + $0x48] sm:$0xff] %vm58_vm0, %v372_v2  ;;  %379 = vst.msk [vmem:[#allocation9] sm:$0xff] %vm58_vm0, %v363_v6  ;;  %v343_v14 = vld [vmem:[#allocation2 + $0x18] sm:$0xff]  ;;  %v311_v16 = vadd.f32 %v256_v12, %v81_v0  ;;  %v319_v17 = vadd.f32 %v296_v13, %v89_v5 }
 0x125   :  { %387 = vst.msk [vmem:[#allocation9 + $0x40] sm:$0xff] %vm58_vm0, %v371_v7  ;;  %v351_v15 = vld [vmem:[#allocation2 + $0x58] sm:$0xff]  ;;  %v366_v18 = vadd.f32 %v709_v51, %v343_v14  ;;  %v342_v20 = vld [vmem:[#allocation2 + $0x10] sm:$0xff]  ;;  %328 = vst.msk [vmem:[#allocation2 + $0x38] sm:$0xff] %vm58_vm0, %v312_v10 }
 0x126   :  { %v374_v19 = vadd.f32 %v709_v51, %v351_v15  ;;  %v350_v21 = vld [vmem:[#allocation2 + $0x50] sm:$0xff]  ;;  %336 = vst.msk [vmem:[#allocation2 + $0x78] sm:$0xff] %vm58_vm0, %v320_v11  ;;  %v365_v22 = vadd.f32 %v709_v51, %v342_v20  ;;  %327 = vst.msk [vmem:[#allocation2 + $0x30] sm:$0xff] %vm58_vm0, %v311_v16 }
 0x127   :  { %v373_v23 = vadd.f32 %v709_v51, %v350_v21  ;;  %335 = vst.msk [vmem:[#allocation2 + $0x70] sm:$0xff] %vm58_vm0, %v319_v17  ;;  %382 = vst.msk [vmem:[#allocation9 + $0x18] sm:$0xff] %vm58_vm0, %v366_v18 }
 0x128   :  { %390 = vst.msk [vmem:[#allocation9 + $0x58] sm:$0xff] %vm58_vm0, %v374_v19  ;;  %381 = vst.msk [vmem:[#allocation9 + $0x10] sm:$0xff] %vm58_vm0, %v365_v22  ;;  %v345_v24 = vld [vmem:[#allocation2 + $0x28] sm:$0xff] }
 0x129   :  { %389 = vst.msk [vmem:[#allocation9 + $0x50] sm:$0xff] %vm58_vm0, %v373_v23  ;;  %v353_v25 = vld [vmem:[#allocation2 + $0x68] sm:$0xff]  ;;  %v368_v26 = vadd.f32 %v709_v51, %v345_v24  ;;  %v344_v28 = vld [vmem:[#allocation2 + $0x20] sm:$0xff] }
 0x12a   :  { %v376_v27 = vadd.f32 %v709_v51, %v353_v25  ;;  %v352_v29 = vld [vmem:[#allocation2 + $0x60] sm:$0xff]  ;;  %v367_v30 = vadd.f32 %v709_v51, %v344_v28 }
 0x12b   :  { %v375_v31 = vadd.f32 %v709_v51, %v352_v29  ;;  %384 = vst.msk [vmem:[#allocation9 + $0x28] sm:$0xff] %vm58_vm0, %v368_v26 }
 0x12c   :  { %392 = vst.msk [vmem:[#allocation9 + $0x68] sm:$0xff] %vm58_vm0, %v376_v27  ;;  %383 = vst.msk [vmem:[#allocation9 + $0x20] sm:$0xff] %vm58_vm0, %v367_v30  ;;  %v347_v32 = vld [vmem:[#allocation2 + $0x38] sm:$0xff] }
 0x12d   :  { %391 = vst.msk [vmem:[#allocation9 + $0x60] sm:$0xff] %vm58_vm0, %v375_v31  ;;  %v355_v33 = vld [vmem:[#allocation2 + $0x78] sm:$0xff]  ;;  %v370_v34 = vadd.f32 %v709_v51, %v347_v32  ;;  %v346_v36 = vld [vmem:[#allocation2 + $0x30] sm:$0xff] }
 0x12e   :  { %v378_v35 = vadd.f32 %v709_v51, %v355_v33  ;;  %v354_v37 = vld [vmem:[#allocation2 + $0x70] sm:$0xff]  ;;  %v369_v38 = vadd.f32 %v709_v51, %v346_v36 }
 0x12f   :  { %v377_v39 = vadd.f32 %v709_v51, %v354_v37  ;;  %386 = vst.msk [vmem:[#allocation9 + $0x38] sm:$0xff] %vm58_vm0, %v370_v34 }
 0x130   :  { %394 = vst.msk [vmem:[#allocation9 + $0x78] sm:$0xff] %vm58_vm0, %v378_v35  ;;  %385 = vst.msk [vmem:[#allocation9 + $0x30] sm:$0xff] %vm58_vm0, %v369_v38 }
 0x131   :  { %393 = vst.msk [vmem:[#allocation9 + $0x70] sm:$0xff] %vm58_vm0, %v377_v39 }
 0x132   :  { %578 = shalt.err (!%p575_p0)
}
 0x133   :  { %s579_s28 = scalar_lea.hbm %s771_s3, 2048 }
 0x134   :  { %p580_p1 = scmp.ne.s32.totalorder %s771_s3, %s579_s28  ;;  %p583_p2 = scmp.lt.u32.totalorder %s579_s28, %s771_s3 }
 0x136   :  { %p585_p3 = pnand %p583_p2, %p580_p1 }
 0x138   :  { %588 = shalt.err (!%p585_p3)
}
 0x139   :  { %406 = dma.vmem_to_hbm [thread:$0]  %s401_s22, 2048, %s771_s3, [#allocation5], %s597_s24, %s597_s24, %s598_s25  }
 0x13a   :  { %593 = dma.done.wait [#allocation5], 2048  }
 0x13b   :  { %594 = vsyncadd [#allocation5], 4294965248 }
 0x13c   :  { %410 = vsyncpa [#allocation4], 1 }
 0x13d   :  { %411 = vsyncpa [#allocation7], 1 }
 0x13e   :  { %412 = vsyncpa [#allocation5], 1 }

</bundles_post_ra>
